<compile_context>
chip_gen: v5e
topology: v5e:2x2
jax: 0.10.0
libtpu: 0.0.40
codegen_flags: <defaults>
</compile_context>

<pallas_src>
import jax
import jax.numpy as jnp
from jax.experimental import pallas as pl
from jax.experimental.pallas import tpu as pltpu

EPS = 1e-5
LANES = 128
H1 = 128
H2 = 64


def _bn_folded(h, gamma, beta):
    """Training-mode BatchNorm1d with the affine folded into scale/shift."""
    mean = jnp.mean(h, axis=0, keepdims=True)
    var = jnp.mean(h * h, axis=0, keepdims=True) - mean * mean
    var = jnp.maximum(var, 0.0)                    # guard one-pass cancellation
    scale = gamma * jax.lax.rsqrt(var + EPS)       # (1, F)
    shift = beta - mean * scale                    # (1, F)
    return h * scale + shift                       # 2 VALU ops / element


def mlp_kernel(x_ref, w1_ref, w2_ref, w3_ref, p_ref, o_ref):
    # Packed per-feature params, one (8, 128) f32 tile:
    #   row 0: b1   row 1: g1   row 2: be1
    #   row 3: b2   row 4: g2   row 5: be2
    #   row 6: b3   row 7: unused
    p = p_ref[...]
    b1, g1, be1 = p[0:1, :], p[1:2, :], p[2:3, :]
    b2, g2, be2 = p[3:4, :], p[4:5, :], p[5:6, :]
    b3 = p[6:7, :]

    # dense1 (bf16 in, f32 acc) + ReLU + BN(128)
    h1 = jnp.dot(x_ref[...], w1_ref[...],
                 preferred_element_type=jnp.float32) + b1
    h1 = _bn_folded(jnp.maximum(h1, 0.0), g1, be1)

    # dense2 (64 -> padded to 128 lanes) + ReLU + BN
    # padded lanes carry gamma=beta=0, so they stay exactly 0 through BN.
    h2 = jnp.dot(h1.astype(jnp.bfloat16), w2_ref[...],
                 preferred_element_type=jnp.float32) + b2
    h2 = _bn_folded(jnp.maximum(h2, 0.0), g2, be2)

    # output linear (nlabels padded to 128 lanes -> full unmasked vst)
    o_ref[...] = (jnp.dot(h2.astype(jnp.bfloat16), w3_ref[...],
                          preferred_element_type=jnp.float32) + b3
                  ).astype(o_ref.dtype)


def _prepare_params(params, nlabels):
    """Pad/pack/cast parameters once in the wrapper (lane-dense, bf16 weights)."""
    (w1, b1, g1, be1, w2, b2, g2, be2, w3, b3) = params

    w1_p = w1.astype(jnp.bfloat16)                                    # (nf, 128)
    w2_p = (jnp.zeros((H1, LANES), jnp.float32)
            .at[:, :H2].set(w2)).astype(jnp.bfloat16)                 # (128, 128)
    w3_p = (jnp.zeros((LANES, LANES), jnp.float32)
            .at[:H2, :nlabels].set(w3)).astype(jnp.bfloat16)          # (128, 128)

    pk = jnp.zeros((8, LANES), jnp.float32)
    pk = pk.at[0, :H1].set(b1.reshape(-1))
    pk = pk.at[1, :H1].set(g1.reshape(-1))
    pk = pk.at[2, :H1].set(be1.reshape(-1))
    pk = pk.at[3, :H2].set(b2.reshape(-1))
    pk = pk.at[4, :H2].set(g2.reshape(-1))
    pk = pk.at[5, :H2].set(be2.reshape(-1))
    pk = pk.at[6, :nlabels].set(b3.reshape(-1))
    return w1_p, w2_p, w3_p, pk


@jax.jit
def mlp_forward(x, params):
    B = x.shape[0]
    nlabels = params[-2].shape[1]
    w1_p, w2_p, w3_p, pk = _prepare_params(params, nlabels)

    vmem = pl.BlockSpec(memory_space=pltpu.MemorySpace.VMEM)
    out_pad = pl.pallas_call(
        mlp_kernel,
        out_shape=jax.ShapeDtypeStruct((B, LANES), jnp.float32),
        in_specs=[vmem] * 5,
        out_specs=vmem,
    )(x.astype(jnp.bfloat16), w1_p, w2_p, w3_p, pk)
    return out_pad[:, :nlabels]


def init_params(key, nfeatures, nlabels):
    """PyTorch-default-style init: Linear uniform(+-1/sqrt(fan_in)),
    BatchNorm1d gamma=1, beta=0.  Linear weights stored as (in, out)."""
    ks = jax.random.split(key, 6)

    def linear(kw, kb, fan_in, fan_out):
        bound = 1.0 / jnp.sqrt(fan_in)
        w = jax.random.uniform(kw, (fan_in, fan_out), jnp.float32, -bound, bound)
        b = jax.random.uniform(kb, (1, fan_out), jnp.float32, -bound, bound)
        return w, b

    w1, b1 = linear(ks[0], ks[1], nfeatures, H1)
    w2, b2 = linear(ks[2], ks[3], H1, H2)
    w3, b3 = linear(ks[4], ks[5], H2, nlabels)

    g1 = jnp.ones((1, H1), jnp.float32)
    be1 = jnp.zeros((1, H1), jnp.float32)
    g2 = jnp.ones((1, H2), jnp.float32)
    be2 = jnp.zeros((1, H2), jnp.float32)

    return (w1, b1, g1, be1, w2, b2, g2, be2, w3, b3)


def mlp_reference(x, params):
    """Pure-JAX reference (PyTorch training-mode semantics).  Matmul inputs
    are cast to bf16 with f32 accumulation to mirror the kernel's precision
    choice; BatchNorm uses the standard two-pass f32 form."""
    (w1, b1, g1, be1, w2, b2, g2, be2, w3, b3) = params

    def dot(a, b):
        return jnp.dot(a.astype(jnp.bfloat16), b.astype(jnp.bfloat16),
                       preferred_element_type=jnp.float32)

    def bn(h, g, bta):
        m = jnp.mean(h, axis=0, keepdims=True)
        v = jnp.mean((h - m) ** 2, axis=0, keepdims=True)
        return (h - m) / jnp.sqrt(v + EPS) * g + bta

    h = jnp.maximum(dot(x, w1) + b1, 0.0)
    h = bn(h, g1, be1)
    h = jnp.maximum(dot(h, w2) + b2, 0.0)
    h = bn(h, g2, be2)
    return dot(h, w3) + b3


if __name__ == "__main__":
    B, NFEATURES, NLABELS = 8, 32, 10

    key = jax.random.PRNGKey(0)
    kx, kp = jax.random.split(key)
    x = jax.random.normal(kx, (B, NFEATURES), dtype=jnp.float32)
    params = init_params(kp, NFEATURES, NLABELS)

    out = mlp_forward(x, params)
    jax.block_until_ready(out)

    ref = mlp_reference(x, params)
    assert out.shape == (B, NLABELS)
    assert jnp.allclose(out, ref, atol=1e-2, rtol=1e-2)

    print("KERNEL_OK")
</pallas_src>

<mosaic_0001>
module attributes {stable_mosaic.version = 11 : i64} {
  func.func @mlp_kernel(%arg0: memref<8x32xbf16, #tpu.memory_space<vmem>>, %arg1: memref<32x128xbf16, #tpu.memory_space<vmem>>, %arg2: memref<128x128xbf16, #tpu.memory_space<vmem>>, %arg3: memref<128x128xbf16, #tpu.memory_space<vmem>>, %arg4: memref<8x128xf32, #tpu.memory_space<vmem>>, %arg5: memref<8x128xf32, #tpu.memory_space<vmem>>) attributes {dimension_semantics = [], scalar_prefetch = 0 : i64, scratch_operands = 0 : i64, tpu.core_type = #tpu.core_type<tc>} {
    %c0 = arith.constant 0 : index
    %c0_0 = arith.constant 0 : index
    %0 = vector.load %arg4[%c0, %c0_0] : memref<8x128xf32, #tpu.memory_space<vmem>>, vector<8x128xf32>
    %1 = vector.extract_strided_slice %0 {offsets = [0, 0], sizes = [1, 128], strides = [1, 1]} : vector<8x128xf32> to vector<1x128xf32>
    %2 = vector.extract_strided_slice %0 {offsets = [1, 0], sizes = [1, 128], strides = [1, 1]} : vector<8x128xf32> to vector<1x128xf32>
    %3 = vector.extract_strided_slice %0 {offsets = [2, 0], sizes = [1, 128], strides = [1, 1]} : vector<8x128xf32> to vector<1x128xf32>
    %4 = vector.extract_strided_slice %0 {offsets = [3, 0], sizes = [1, 128], strides = [1, 1]} : vector<8x128xf32> to vector<1x128xf32>
    %5 = vector.extract_strided_slice %0 {offsets = [4, 0], sizes = [1, 128], strides = [1, 1]} : vector<8x128xf32> to vector<1x128xf32>
    %6 = vector.extract_strided_slice %0 {offsets = [5, 0], sizes = [1, 128], strides = [1, 1]} : vector<8x128xf32> to vector<1x128xf32>
    %7 = vector.extract_strided_slice %0 {offsets = [6, 0], sizes = [1, 128], strides = [1, 1]} : vector<8x128xf32> to vector<1x128xf32>
    %c0_1 = arith.constant 0 : index
    %c0_2 = arith.constant 0 : index
    %8 = vector.load %arg0[%c0_1, %c0_2] : memref<8x32xbf16, #tpu.memory_space<vmem>>, vector<8x32xbf16>
    %c0_3 = arith.constant 0 : index
    %c0_4 = arith.constant 0 : index
    %9 = vector.load %arg1[%c0_3, %c0_4] : memref<32x128xbf16, #tpu.memory_space<vmem>>, vector<32x128xbf16>
    %cst = arith.constant dense<0.000000e+00> : vector<8x128xf32>
    %10 = tpu.matmul %8, %9, %cst {dimension_numbers = #tpu.dot_dimension_numbers<[1], [0], [0], [1], [0, 0, 1, 1], [], []>} : vector<8x32xbf16>, vector<32x128xbf16>, vector<8x128xf32> -> vector<8x128xf32>
    %11 = vector.broadcast %1 : vector<1x128xf32> to vector<8x128xf32>
    %12 = arith.addf %10, %11 : vector<8x128xf32>
    %cst_5 = arith.constant 0.000000e+00 : f32
    %13 = vector.broadcast %cst_5 : f32 to vector<8x128xf32>
    %14 = arith.maximumf %12, %13 : vector<8x128xf32>
    %cst_6 = arith.constant dense<0.000000e+00> : vector<128xf32>
    %15 = vector.multi_reduction <add>, %14, %cst_6 [0] : vector<8x128xf32> to vector<128xf32>
    %16 = vector.shape_cast %15 : vector<128xf32> to vector<1x128xf32>
    %cst_7 = arith.constant 8.000000e+00 : f32
    %17 = vector.broadcast %cst_7 : f32 to vector<1x128xf32>
    %18 = arith.divf %16, %17 : vector<1x128xf32>
    %19 = arith.mulf %14, %14 : vector<8x128xf32>
    %cst_8 = arith.constant dense<0.000000e+00> : vector<128xf32>
    %20 = vector.multi_reduction <add>, %19, %cst_8 [0] : vector<8x128xf32> to vector<128xf32>
    %21 = vector.shape_cast %20 : vector<128xf32> to vector<1x128xf32>
    %cst_9 = arith.constant 8.000000e+00 : f32
    %22 = vector.broadcast %cst_9 : f32 to vector<1x128xf32>
    %23 = arith.divf %21, %22 : vector<1x128xf32>
    %24 = arith.mulf %18, %18 : vector<1x128xf32>
    %25 = arith.subf %23, %24 : vector<1x128xf32>
    %cst_10 = arith.constant 0.000000e+00 : f32
    %26 = vector.broadcast %cst_10 : f32 to vector<1x128xf32>
    %27 = arith.maximumf %25, %26 : vector<1x128xf32>
    %cst_11 = arith.constant 9.99999974E-6 : f32
    %28 = vector.broadcast %cst_11 : f32 to vector<1x128xf32>
    %29 = arith.addf %27, %28 : vector<1x128xf32>
    %30 = math.rsqrt %29 : vector<1x128xf32>
    %31 = arith.mulf %2, %30 : vector<1x128xf32>
    %32 = arith.mulf %18, %31 : vector<1x128xf32>
    %33 = arith.subf %3, %32 : vector<1x128xf32>
    %34 = vector.broadcast %31 : vector<1x128xf32> to vector<8x128xf32>
    %35 = arith.mulf %14, %34 : vector<8x128xf32>
    %36 = vector.broadcast %33 : vector<1x128xf32> to vector<8x128xf32>
    %37 = arith.addf %35, %36 : vector<8x128xf32>
    %38 = arith.truncf %37 : vector<8x128xf32> to vector<8x128xbf16>
    %c0_12 = arith.constant 0 : index
    %c0_13 = arith.constant 0 : index
    %39 = vector.load %arg2[%c0_12, %c0_13] : memref<128x128xbf16, #tpu.memory_space<vmem>>, vector<128x128xbf16>
    %cst_14 = arith.constant dense<0.000000e+00> : vector<8x128xf32>
    %40 = tpu.matmul %38, %39, %cst_14 {dimension_numbers = #tpu.dot_dimension_numbers<[1], [0], [0], [1], [0, 0, 1, 1], [], []>} : vector<8x128xbf16>, vector<128x128xbf16>, vector<8x128xf32> -> vector<8x128xf32>
    %41 = vector.broadcast %4 : vector<1x128xf32> to vector<8x128xf32>
    %42 = arith.addf %40, %41 : vector<8x128xf32>
    %cst_15 = arith.constant 0.000000e+00 : f32
    %43 = vector.broadcast %cst_15 : f32 to vector<8x128xf32>
    %44 = arith.maximumf %42, %43 : vector<8x128xf32>
    %cst_16 = arith.constant dense<0.000000e+00> : vector<128xf32>
    %45 = vector.multi_reduction <add>, %44, %cst_16 [0] : vector<8x128xf32> to vector<128xf32>
    %46 = vector.shape_cast %45 : vector<128xf32> to vector<1x128xf32>
    %cst_17 = arith.constant 8.000000e+00 : f32
    %47 = vector.broadcast %cst_17 : f32 to vector<1x128xf32>
    %48 = arith.divf %46, %47 : vector<1x128xf32>
    %49 = arith.mulf %44, %44 : vector<8x128xf32>
    %cst_18 = arith.constant dense<0.000000e+00> : vector<128xf32>
    %50 = vector.multi_reduction <add>, %49, %cst_18 [0] : vector<8x128xf32> to vector<128xf32>
    %51 = vector.shape_cast %50 : vector<128xf32> to vector<1x128xf32>
    %cst_19 = arith.constant 8.000000e+00 : f32
    %52 = vector.broadcast %cst_19 : f32 to vector<1x128xf32>
    %53 = arith.divf %51, %52 : vector<1x128xf32>
    %54 = arith.mulf %48, %48 : vector<1x128xf32>
    %55 = arith.subf %53, %54 : vector<1x128xf32>
    %cst_20 = arith.constant 0.000000e+00 : f32
    %56 = vector.broadcast %cst_20 : f32 to vector<1x128xf32>
    %57 = arith.maximumf %55, %56 : vector<1x128xf32>
    %cst_21 = arith.constant 9.99999974E-6 : f32
    %58 = vector.broadcast %cst_21 : f32 to vector<1x128xf32>
    %59 = arith.addf %57, %58 : vector<1x128xf32>
    %60 = math.rsqrt %59 : vector<1x128xf32>
    %61 = arith.mulf %5, %60 : vector<1x128xf32>
    %62 = arith.mulf %48, %61 : vector<1x128xf32>
    %63 = arith.subf %6, %62 : vector<1x128xf32>
    %64 = vector.broadcast %61 : vector<1x128xf32> to vector<8x128xf32>
    %65 = arith.mulf %44, %64 : vector<8x128xf32>
    %66 = vector.broadcast %63 : vector<1x128xf32> to vector<8x128xf32>
    %67 = arith.addf %65, %66 : vector<8x128xf32>
    %68 = arith.truncf %67 : vector<8x128xf32> to vector<8x128xbf16>
    %c0_22 = arith.constant 0 : index
    %c0_23 = arith.constant 0 : index
    %69 = vector.load %arg3[%c0_22, %c0_23] : memref<128x128xbf16, #tpu.memory_space<vmem>>, vector<128x128xbf16>
    %cst_24 = arith.constant dense<0.000000e+00> : vector<8x128xf32>
    %70 = tpu.matmul %68, %69, %cst_24 {dimension_numbers = #tpu.dot_dimension_numbers<[1], [0], [0], [1], [0, 0, 1, 1], [], []>} : vector<8x128xbf16>, vector<128x128xbf16>, vector<8x128xf32> -> vector<8x128xf32>
    %71 = vector.broadcast %7 : vector<1x128xf32> to vector<8x128xf32>
    %72 = arith.addf %70, %71 : vector<8x128xf32>
    %c0_25 = arith.constant 0 : index
    %c0_26 = arith.constant 0 : index
    %73 = vector.load %arg5[%c0_25, %c0_26] : memref<8x128xf32, #tpu.memory_space<vmem>>, vector<8x128xf32>
    tpu.vector_store %arg5[%c0_25, %c0_26], %72 {strides = array<i32>} : memref<8x128xf32, #tpu.memory_space<vmem>>, vector<8x128xf32>,
    return
  }
}

</mosaic_0001>

<bundles_post_ra>
// kernel: mlp_forward.1
= control target key start
LH: loop header
LB: loop body
LE: loop exit
PB: predicated region body
PF: predicated region fallthrough
CT: control target
= control target key end

     0   :  { %s555_s0 = inlined_call_operand.vmem [shape: bf16[8,32], index: 0, kind: input, shape index: {}]   ;;  %s556_s1 = inlined_call_operand.vmem [shape: bf16[32,128], index: 1, kind: input, shape index: {}]   ;;  %s557_s2 = inlined_call_operand.vmem [shape: bf16[128,128], index: 2, kind: input, shape index: {}]   ;;  %s558_s3 = inlined_call_operand.vmem [shape: bf16[128,128], index: 3, kind: input, shape index: {}]   ;;  %s559_s4 = inlined_call_operand.vmem [shape: f32[8,128], index: 4, kind: input, shape index: {}]   ;;  %s560_s5 = inlined_call_operand.hbm [shape: f32[8,128], index: 5, kind: output, shape index: {}]  }
   0x1   :  { %v394_v0 = vld [vmem:[%s556_s1 + $0x8] sm:$0xff] }
   0x2   :  { %10 = vsyncpa [#allocation3], 0  ;;  %51 = vmatpush.bf16.msra.mxu0 %v394_v0  ;;  %v393_v1 = vld [vmem:[%s556_s1] sm:$0xff]  ;;  %vm41_vm0 = vcmask 261120   ;;  %v402_v3 = vld [vmem:[%s557_s2 + $0x38] sm:$0xff]  ;;  %v445_v5 = vmov 8.0  }
   0x3   :  { %v23_v2 = vld [vmem:[%s555_s0] sm:$0xf]  ;;  %171 = vmatpush.bf16.msra.mxu1 %v402_v3  ;;  %v401_v4 = vld [vmem:[%s557_s2 + $0x30] sm:$0xff]  ;;  %413 = vrcp.f32 %v445_v5  ;;  %v400_v6 = vld [vmem:[%s557_s2 + $0x28] sm:$0xff]  ;;  %s311_s30 = sshll.u32 %s560_s5, 4  ;;  %s312_s30 = int_to_ptr.hbm [resolvable:$true] %s311_s30 }
   0x4   :  { %v498_v7 = vld [vmem:[%s559_s4] sm:$0xff]  ;;  %v398_v12 = vld [vmem:[%s557_s2 + $0x18] sm:$0xff]  ;;  %v397_v17 = vld [vmem:[%s557_s2 + $0x10] sm:$0xff] }
   0x5   :  { %v399_v9 = vld [vmem:[%s557_s2 + $0x20] sm:$0xff]  ;;  %v28_v10 = vperm.slane %v498_v7, 0  ;;  %v396_v23 = vld [vmem:[%s557_s2 + $0x8] sm:$0xff]  ;;  %v410_v59 = vld [vmem:[%s558_s3 + $0x38] sm:$0xff]  ;;  %v122_v63 = vperm.slane %v498_v7, 3 }
   0x6   :  { %52 = vmatpush.bf16.msra.mxu0 %v393_v1  ;;  %v395_v30 = vld [vmem:[%s557_s2] sm:$0xff]  ;;  %290 = vmatpush.bf16.msra.mxu2 %v410_v59  ;;  %v409_v60 = vld [vmem:[%s558_s3 + $0x30] sm:$0xff]  ;;  %v408_v61 = vld [vmem:[%s558_s3 + $0x28] sm:$0xff] }
   0x7   :  { %172 = vmatpush.bf16.msra.mxu1 %v401_v4  ;;  %v407_v62 = vld [vmem:[%s558_s3 + $0x20] sm:$0xff]  ;;  %v406_v0 = vld [vmem:[%s558_s3 + $0x18] sm:$0xff]  ;;  %v405_v4 = vld [vmem:[%s558_s3 + $0x10] sm:$0xff] }
   0x9   :  { %328 = vmatmul.msk.bf16.vlgmr.msra.gmra.mxu0 %vm41_vm0, %v23_v2  ;;  %v414_v8 = vpop.eup %413 }
   0xa   :  { %v66_v11 = vmul.f32 8.0, %v414_v8  ;;  %vm70_vm1 = vweird.f32 %v414_v8  ;;  %291 = vmatpush.bf16.msra.mxu2 %v409_v60 }
   0xb   :  { %173 = vmatpush.bf16.msra.mxu1 %v400_v6 }
   0xc   :  { %v67_v15 = vsub.f32 1.0, %v66_v11 }
   0xe   :  { %v68_v20 = vmul.f32 %v414_v8, %v67_v15  ;;  %292 = vmatpush.bf16.msra.mxu2 %v408_v61 }
   0xf   :  { %174 = vmatpush.bf16.msra.mxu1 %v399_v9 }
  0x10   :  { %v69_v27 = vadd.f32 %v414_v8, %v68_v20 }
  0x12   :  { %v516_v33 = vsel %vm70_vm1, %v414_v8, %v69_v27  ;;  %293 = vmatpush.bf16.msra.mxu2 %v407_v62 }
  0x13   :  { %175 = vmatpush.bf16.msra.mxu1 %v398_v12 }
  0x16   :  { %294 = vmatpush.bf16.msra.mxu2 %v406_v0 }
  0x17   :  { %176 = vmatpush.bf16.msra.mxu1 %v397_v17 }
  0x1a   :  { %295 = vmatpush.bf16.msra.mxu2 %v405_v4 }
  0x1b   :  { %177 = vmatpush.bf16.msra.mxu1 %v396_v23 }
  0x1f   :  { %178 = vmatpush.bf16.msra.mxu1 %v395_v30 }
  0x86   :  { %v54_v13 = vpop.f32.mrf.mxu0 }
  0x87   :  { %v55_v14 = vadd.f32 %v54_v13, %v28_v10  ;;  %v404_v10 = vld [vmem:[%s558_s3 + $0x8] sm:$0xff] }
  0x88   :  { %296 = vmatpush.bf16.msra.mxu2 %v404_v10 }
  0x89   :  { %v58_v16 = vmax.f32 %v55_v14, 0.0 }
  0x8b   :  { %v59_v18 = vrot.slane %v58_v16, 4  ;;  %v73_v19 = vmul.f32 %v58_v16, %v58_v16 }
  0x8d   :  { %v60_v21 = vadd.f32 %v59_v18, %v58_v16  ;;  %v74_v22 = vrot.slane %v73_v19, 4 }
  0x8e   :  { %v56_v24 = vpop.f32.mrf.mxu0 }
  0x8f   :  { %v61_v25 = vrot.slane %v60_v21, 2  ;;  %v75_v26 = vadd.f32 %v74_v22, %v73_v19 }
  0x91   :  { %v62_v28 = vadd.f32 %v61_v25, %v60_v21  ;;  %v76_v29 = vrot.slane %v75_v26, 2 }
  0x93   :  { %v77_v31 = vadd.f32 %v76_v29, %v75_v26  ;;  %v63_v32 = vrot.slane %v62_v28, 1 }
  0x95   :  { %v78_v34 = vrot.slane %v77_v31, 1  ;;  %v64_v35 = vadd.f32 %v63_v32, %v62_v28 }
  0x97   :  { %v79_v36 = vadd.f32 %v78_v34, %v77_v31  ;;  %v72_v37 = vmul.f32 %v516_v33, %v64_v35 }
  0x99   :  { %v80_v38 = vmul.f32 %v79_v36, %v516_v33  ;;  %v81_v39 = vmul.f32 %v72_v37, %v72_v37 }
  0x9b   :  { %v82_v40 = vsub.f32 %v80_v38, %v81_v39 }
  0x9d   :  { %v83_v41 = vmax.f32 %v82_v40, 0.0 }
  0x9f   :  { %v84_v42 = vadd.f32 1e-05, %v83_v41 }
  0xa1   :  { %415 = vrsqrt.f32 %v84_v42  ;;  %vm91_vm3 = vweird.f32 %v84_v42 }
  0xa7   :  { %v416_v43 = vpop.eup %415 }
  0xa8   :  { %v86_v44 = vmul.f32 %v416_v43, %v84_v42  ;;  %vm92_vm2 = vweird.f32 %v416_v43 }
  0xa9   :  { %vm93_vm4 = vmor %vm91_vm3, %vm92_vm2 }
  0xaa   :  { %v87_v45 = vmul.f32 %v416_v43, %v86_v44  ;;  %v241_v44 = vperm.slane %v498_v7, 6 }
  0xac   :  { %v88_v46 = vmul.f32 0.5, %v87_v45 }
  0xae   :  { %v89_v47 = vsub.f32 1.5, %v88_v46 }
  0xb0   :  { %v90_v48 = vmul.f32 %v416_v43, %v89_v47 }
  0xb2   :  { %v94_v49 = vsel %vm93_vm4, %v416_v43, %v90_v48 }
  0xb3   :  { %v95_v50 = vmul.f32 %v94_v49, %v498_v7 }
  0xb5   :  { %v96_v51 = vmul.f32 %v95_v50, %v72_v37  ;;  %v101_v53 = vperm.slane %v95_v50, 1 }
  0xb7   :  { %v98_v52 = vrot.slane %v96_v51, 7  ;;  %v102_v55 = vmul.f32 %v101_v53, %v58_v16  ;;  %v403_v16 = vld [vmem:[%s558_s3] sm:$0xff]  ;;  %s446_s3 = smov [#allocation2]  }
  0xb8   :  { %297 = vmatpush.bf16.msra.mxu2 %v403_v16  ;;  %s309_s28 = sshll.u32 %s446_s3, 4  ;;  %s310_s28 = int_to_ptr.vmem [resolvable:$true] %s309_s28 }
  0xb9   :  { %v100_v54 = vsub.f32 %v498_v7, %v98_v52 }
  0xbb   :  { %v103_v56 = vperm.slane %v100_v54, 2 }
  0xbd   :  { %v104_v57 = vadd.f32 %v103_v56, %v102_v55 }
  0xbf   :  { %v105_v58 = vpack.c.bf16 %v104_v57, %v104_v57 }
  0xc1   :  { %179 = vmatmul.bf16.vlgmr.msra.gmra.mxu1 %v105_v58 }
 0x13e   :  { %v180_v1 = vpop.f32.mrf.mxu1 }
 0x13f   :  { %v181_v2 = vadd.f32 %v180_v1, %v122_v63 }
 0x141   :  { %v184_v3 = vmax.f32 %v181_v2, 0.0 }
 0x143   :  { %v185_v5 = vrot.slane %v184_v3, 4  ;;  %v192_v6 = vmul.f32 %v184_v3, %v184_v3 }
 0x145   :  { %v186_v8 = vadd.f32 %v185_v5, %v184_v3  ;;  %v193_v9 = vrot.slane %v192_v6, 4 }
 0x146   :  { %v182_v11 = vpop.f32.mrf.mxu1 }
 0x147   :  { %v187_v12 = vrot.slane %v186_v8, 2  ;;  %v194_v13 = vadd.f32 %v193_v9, %v192_v6 }
 0x149   :  { %v188_v14 = vadd.f32 %v187_v12, %v186_v8  ;;  %v195_v15 = vrot.slane %v194_v13, 2 }
 0x14b   :  { %v196_v17 = vadd.f32 %v195_v15, %v194_v13  ;;  %v189_v18 = vrot.slane %v188_v14, 1 }
 0x14d   :  { %v197_v19 = vrot.slane %v196_v17, 1  ;;  %v190_v20 = vadd.f32 %v189_v18, %v188_v14 }
 0x14f   :  { %v198_v21 = vadd.f32 %v197_v19, %v196_v17  ;;  %v191_v22 = vmul.f32 %v190_v20, %v516_v33 }
 0x151   :  { %v199_v23 = vmul.f32 %v198_v21, %v516_v33  ;;  %v200_v24 = vmul.f32 %v191_v22, %v191_v22 }
 0x153   :  { %v201_v25 = vsub.f32 %v199_v23, %v200_v24 }
 0x155   :  { %v202_v26 = vmax.f32 %v201_v25, 0.0 }
 0x157   :  { %v203_v27 = vadd.f32 1e-05, %v202_v26 }
 0x159   :  { %417 = vrsqrt.f32 %v203_v27  ;;  %vm210_vm6 = vweird.f32 %v203_v27 }
 0x15f   :  { %v418_v28 = vpop.eup %417 }
 0x160   :  { %v205_v29 = vmul.f32 %v418_v28, %v203_v27  ;;  %vm211_vm5 = vweird.f32 %v418_v28 }
 0x161   :  { %vm212_vm7 = vmor %vm210_vm6, %vm211_vm5 }
 0x162   :  { %v206_v30 = vmul.f32 %v418_v28, %v205_v29 }
 0x164   :  { %v207_v31 = vmul.f32 0.5, %v206_v30 }
 0x166   :  { %v208_v32 = vsub.f32 1.5, %v207_v31 }
 0x168   :  { %v209_v34 = vmul.f32 %v418_v28, %v208_v32 }
 0x16a   :  { %v213_v35 = vsel %vm212_vm7, %v418_v28, %v209_v34 }
 0x16b   :  { %v214_v36 = vmul.f32 %v213_v35, %v498_v7 }
 0x16d   :  { %v215_v37 = vmul.f32 %v214_v36, %v191_v22  ;;  %v220_v33 = vperm.slane %v214_v36, 4 }
 0x16f   :  { %v217_v38 = vrot.slane %v215_v37, 7  ;;  %v221_v40 = vmul.f32 %v220_v33, %v184_v3 }
 0x171   :  { %v219_v39 = vsub.f32 %v498_v7, %v217_v38 }
 0x173   :  { %v222_v41 = vperm.slane %v219_v39, 5 }
 0x175   :  { %v223_v42 = vadd.f32 %v222_v41, %v221_v40 }
 0x177   :  { %v224_v43 = vpack.c.bf16 %v223_v42, %v223_v42 }
 0x179   :  { %298 = vmatmul.bf16.vlgmr.msra.gmra.mxu2 %v224_v43 }
 0x1fc   :  { %v299_v45 = vpop.f32.mrf.mxu2 }
 0x1fd   :  { %v300_v46 = vadd.f32 %v299_v45, %v241_v44 }
 0x1ff   :  { %303 = vst [vmem:[#allocation2] sm:$0xff] %v300_v46 }
 0x200   :  { %314 = dma.vmem_to_hbm [thread:$0]  %s310_s28, 128, %s312_s30, [#allocation3]  }
 0x204   :  { %v301_v47 = vpop.f32.mrf.mxu2 }
 0x205   :  { %443 = dma.done.wait [#allocation3], 128  }
 0x206   :  { %444 = vsyncadd [#allocation3], 4294967168 }
 0x207   :  { %319 = vsyncpa [#allocation3], 1 }

</bundles_post_ra>
